<compile_context>
chip_gen: v5e
topology: v5e:2x2
jax: 0.10.0
libtpu: 0.0.40
codegen_flags: <defaults>
</compile_context>

<pallas_src>
import math

import jax
import jax.numpy as jnp
from jax.experimental import pallas as pl
from jax.experimental.pallas import tpu as pltpu


# --------------------------------------------------------------------------------------
# Tile selection (256-wide on v6e/v7x MXUs, 128 elsewhere).
# --------------------------------------------------------------------------------------
def _select_tiles():
    try:
        kind = jax.devices()[0].device_kind.lower()
    except Exception:
        kind = ""
    if ("v6" in kind) or ("v7" in kind):
        return 256, 256
    return 128, 128


_TM, _TN = _select_tiles()
_TK_MAX = 2048  # a 256x2048 bf16 tile is only 1 MiB; keeps K in one (or few) steps

_MM_CPARAMS = pltpu.CompilerParams(
    dimension_semantics=("parallel", "parallel", "arbitrary"),
    vmem_limit_bytes=32 * 1024 * 1024,
)


def _rup(x, m):
    return ((x + m - 1) // m) * m


# --------------------------------------------------------------------------------------
# Pallas kernel 1: K-tiled matmul.  bf16 operands feed the MXU, f32 VMEM accumulator,
# bias applied only on the last K step.
# --------------------------------------------------------------------------------------
def _mm_bias_kernel(a_ref, b_ref, bias_ref, o_ref, acc_ref):
    @pl.when(pl.program_id(2) == 0)
    def _init():
        acc_ref[...] = jnp.zeros_like(acc_ref)

    acc_ref[...] += jnp.dot(a_ref[...], b_ref[...],
                            preferred_element_type=jnp.float32)

    @pl.when(pl.program_id(2) == pl.num_programs(2) - 1)
    def _fin():
        o_ref[...] = (acc_ref[...] + bias_ref[...]).astype(o_ref.dtype)


def pmatmul(a, b, bias=None, out_dtype=jnp.float32):
    """a:(M,K) @ b:(K,N) (+bias) with bf16 MXU operands and f32 accumulation."""
    M, K = a.shape
    K2, N = b.shape
    assert K == K2
    # Adaptive tiles: tiny decoder matmuls (M == batch) are not padded to a full MXU tile.
    tm = min(_TM, _rup(M, 16))
    tn = min(_TN, _rup(N, 128))
    Kp = _rup(K, 128)
    if Kp <= _TK_MAX:
        tk = Kp                                   # single K step, no over-padding
    else:
        nks = -(-Kp // _TK_MAX)                   # ceil div
        tk = _rup(-(-Kp // nks), 128)             # 128-multiple; <=127*nks extra, negligible
        Kp = nks * tk
    Mp, Np = _rup(M, tm), _rup(N, tn)

    a_p = a if (M == Mp and K == Kp) else jnp.pad(a, ((0, Mp - M), (0, Kp - K)))
    b_p = b if (K == Kp and N == Np) else jnp.pad(b, ((0, Kp - K), (0, Np - N)))
    a_p = a_p.astype(jnp.bfloat16)
    b_p = b_p.astype(jnp.bfloat16)
    bias_v = jnp.zeros((N,), jnp.float32) if bias is None else bias.astype(jnp.float32)
    bias_p = jnp.pad(bias_v, (0, Np - N)).reshape(1, Np)

    out = pl.pallas_call(
        _mm_bias_kernel,
        out_shape=jax.ShapeDtypeStruct((Mp, Np), out_dtype),
        grid=(Mp // tm, Np // tn, Kp // tk),
        in_specs=[
            pl.BlockSpec((tm, tk), lambda i, j, k: (i, k)),
            pl.BlockSpec((tk, tn), lambda i, j, k: (k, j)),
            pl.BlockSpec((1, tn), lambda i, j, k: (0, j)),
        ],
        out_specs=pl.BlockSpec((tm, tn), lambda i, j, k: (i, j)),
        scratch_shapes=[pltpu.VMEM((tm, tn), jnp.float32)],
        compiler_params=_MM_CPARAMS,
    )(a_p, b_p, bias_p)
    if Mp == M and Np == N:
        return out
    return out[:M, :N]


# --------------------------------------------------------------------------------------
# Pallas kernel 2: fused counting head
#   (1x1 pred conv as a matmul) -> sigmoid -> * mask -> spatial sum; grid over batch.
# --------------------------------------------------------------------------------------
def _count_pred_kernel(t_ref, w_ref, m_ref, o_ref):
    z = jnp.dot(t_ref[0], w_ref[...], preferred_element_type=jnp.float32)  # (HWp, OCp)
    y = jax.nn.sigmoid(z) * m_ref[0]                                       # pad rows masked to 0
    o_ref[...] = jnp.sum(y, axis=0, keepdims=True)[None]


def counting_pred(t_hw, w, mask_hw):
    """t_hw: (B, HW, 512); w: (512, OC); mask_hw: (B, HW) -> (B, OC)."""
    B, HW, C = t_hw.shape
    OC = w.shape[1]
    HWp, Cp, OCp = _rup(HW, 16), _rup(C, 128), _rup(OC, 128)
    t_p = jnp.pad(t_hw, ((0, 0), (0, HWp - HW), (0, Cp - C))).astype(jnp.bfloat16)
    w_p = jnp.pad(w, ((0, Cp - C), (0, OCp - OC))).astype(jnp.bfloat16)
    m_p = jnp.pad(mask_hw, ((0, 0), (0, HWp - HW))).astype(jnp.float32).reshape(B, HWp, 1)
    out = pl.pallas_call(
        _count_pred_kernel,
        out_shape=jax.ShapeDtypeStruct((B, 1, OCp), jnp.float32),
        grid=(B,),
        in_specs=[
            pl.BlockSpec((1, HWp, Cp), lambda b: (b, 0, 0)),
            pl.BlockSpec((Cp, OCp), lambda b: (0, 0)),
            pl.BlockSpec((1, HWp, 1), lambda b: (b, 0, 0)),
        ],
        out_specs=pl.BlockSpec((1, 1, OCp), lambda b: (b, 0, 0)),
        compiler_params=pltpu.CompilerParams(dimension_semantics=("parallel",)),
    )(t_p, w_p, m_p)
    return out.reshape(B, OCp)[:, :OC]


# --------------------------------------------------------------------------------------
# Pallas kernel 3: fused coverage-attention step (one batch element per grid point)
#   score = tanh(q + coverage + trans); energy = w . score (MXU); masked softmax over HW;
#   context = alpha @ feat (MXU).  trans/feat are loop-invariant bf16 operands.
# --------------------------------------------------------------------------------------
def _attn_step_kernel(q_ref, cov_ref, trans_ref, w_ref, b_ref, mask_ref, feat_ref,
                      ctx_ref, alpha_ref):
    q = q_ref[0]                                                     # (A, 1)  f32
    score = jnp.tanh(q + cov_ref[0] + trans_ref[0].astype(jnp.float32))   # (A, HWp)
    energy = jnp.dot(w_ref[...], score.astype(jnp.bfloat16),
                     preferred_element_type=jnp.float32) + b_ref[0, 0]    # (1, HWp)
    # Per-sample max subtraction (torch uses a global max; the softmax is invariant to the
    # choice of the subtracted constant up to the 1e-10 epsilon).
    energy = energy - jnp.max(energy)
    e = jnp.exp(energy) * mask_ref[0]                                # (1, HWp)
    alpha = e / (jnp.sum(e, axis=-1, keepdims=True) + 1e-10)
    alpha_ref[...] = alpha
    ctx_ref[...] = jnp.dot(alpha.astype(jnp.bfloat16), feat_ref[0],
                           preferred_element_type=jnp.float32)       # (1, Cp)


def attention_step(q_col, cov_t, trans_t, w_row, b11, mask_row, feat):
    """q_col (B,A,1) f32; cov_t (B,A,HWp) f32; trans_t (B,A,HWp) bf16; w_row (1,A) bf16;
    b11 (1,1) f32; mask_row (B,1,HWp) f32; feat (B,HWp,Cp) bf16 -> ctx (B,Cp), alpha (B,HWp)."""
    # TODO(synk): for production H*W / C on v7x (64 MiB VMEM) tile over HW with an online
    # softmax instead of one HWp-wide block per batch element.
    B, A, HWp = cov_t.shape
    Cp = feat.shape[-1]
    ctx, alpha = pl.pallas_call(
        _attn_step_kernel,
        out_shape=(jax.ShapeDtypeStruct((B, Cp), jnp.float32),
                   jax.ShapeDtypeStruct((B, HWp), jnp.float32)),
        grid=(B,),
        in_specs=[
            pl.BlockSpec((1, A, 1), lambda b: (b, 0, 0)),
            pl.BlockSpec((1, A, HWp), lambda b: (b, 0, 0)),
            pl.BlockSpec((1, A, HWp), lambda b: (b, 0, 0)),
            pl.BlockSpec((1, A), lambda b: (0, 0)),
            pl.BlockSpec((1, 1), lambda b: (0, 0)),
            pl.BlockSpec((1, 1, HWp), lambda b: (b, 0, 0)),
            pl.BlockSpec((1, HWp, Cp), lambda b: (b, 0, 0)),
        ],
        out_specs=(
            pl.BlockSpec((1, Cp), lambda b: (b, 0)),
            pl.BlockSpec((1, HWp), lambda b: (b, 0)),
        ),
        compiler_params=pltpu.CompilerParams(dimension_semantics=("parallel",)),
    )(q_col, cov_t, trans_t, w_row, b11, mask_row, feat)
    return ctx, alpha


# --------------------------------------------------------------------------------------
# JAX glue (NHWC): conv via im2col + Pallas matmul (1x1 fast path), linears, pooling, BN
# --------------------------------------------------------------------------------------
def _im2col_nhwc(x, kh, kw, stride, pad):
    # TODO(synk): the patch matrix is still materialized by XLA; moving the gather into the
    # Pallas kernel (halo/strided block reads) would cut HBM traffic further (mostly v5e).
    if pad:
        x = jnp.pad(x, ((0, 0), (pad, pad), (pad, pad), (0, 0)))
    B, Hp, Wp, C = x.shape
    oh = (Hp - kh) // stride + 1
    ow = (Wp - kw) // stride + 1
    cols = []
    for i in range(kh):
        for j in range(kw):
            cols.append(x[:, i:i + stride * oh:stride, j:j + stride * ow:stride, :])
    col = jnp.stack(cols, axis=3)                       # (B, oh, ow, KH*KW, C)
    return col.reshape(B * oh * ow, kh * kw * C), oh, ow


def conv2d(x, w, b=None, stride=1, padding=0):
    """x: (B, H, W, Cin) NHWC; w: (O, Cin, KH, KW) (PyTorch layout); padding: static int."""
    B, H, W, Cin = x.shape
    O, _, KH, KW = w.shape
    if KH == 1 and KW == 1 and stride == 1 and padding == 0:
        out = pmatmul(x.reshape(B * H * W, Cin), w.reshape(O, Cin).T, b)
        return out.reshape(B, H, W, O)
    a, oh, ow = _im2col_nhwc(x, KH, KW, stride, padding)            # (B*oh*ow, KH*KW*Cin)
    w2 = jnp.transpose(w, (2, 3, 1, 0)).reshape(KH * KW * Cin, O)   # matches im2col ordering
    out = pmatmul(a, w2, b)
    return out.reshape(B, oh, ow, O)


def linear(x, w, b=None):
    return pmatmul(x, w.T, b)


def batchnorm2d(x, gamma, beta, eps=1e-5):
    mean = jnp.mean(x, axis=(0, 1, 2), keepdims=True)
    var = jnp.mean((x - mean) ** 2, axis=(0, 1, 2), keepdims=True)
    xn = (x - mean) * jax.lax.rsqrt(var + eps)
    return xn * gamma + beta


def max_pool2_ceil(x):
    B, H, W, C = x.shape
    ph, pw = (-H) % 2, (-W) % 2
    if ph or pw:
        x = jnp.pad(x, ((0, 0), (0, ph), (0, pw), (0, 0)), constant_values=-jnp.inf)
    H2, W2 = x.shape[1] // 2, x.shape[2] // 2
    return x.reshape(B, H2, 2, W2, 2, C).max(axis=(2, 4))


def avg_pool2_ceil(x):
    B, H, W, C = x.shape
    ph, pw = (-H) % 2, (-W) % 2
    if ph or pw:
        x = jnp.pad(x, ((0, 0), (0, ph), (0, pw), (0, 0)))
    H2, W2 = x.shape[1] // 2, x.shape[2] // 2
    return x.reshape(B, H2, 2, W2, 2, C).mean(axis=(2, 4))


# --------------------------------------------------------------------------------------
# DenseNet encoder (NHWC)
# --------------------------------------------------------------------------------------
def bottleneck_fwd(p, x):
    out = conv2d(x, p["conv1_w"])
    out = jax.nn.relu(batchnorm2d(out, p["bn1_g"], p["bn1_b"]))
    out = conv2d(out, p["conv2_w"], padding=1)
    out = jax.nn.relu(batchnorm2d(out, p["bn2_g"], p["bn2_b"]))
    return jnp.concatenate([x, out], axis=-1)


def transition_fwd(p, x):
    out = jax.nn.relu(batchnorm2d(conv2d(x, p["conv_w"]), p["bn_g"], p["bn_b"]))
    return avg_pool2_ceil(out)


def densenet_fwd(p, x):
    out = conv2d(x, p["conv1_w"], stride=2, padding=3)
    out = jax.nn.relu(out)
    out = max_pool2_ceil(out)
    for bp in p["dense1"]:
        out = bottleneck_fwd(bp, out)
    out = transition_fwd(p["trans1"], out)
    for bp in p["dense2"]:
        out = bottleneck_fwd(bp, out)
    out = transition_fwd(p["trans2"], out)
    for bp in p["dense3"]:
        out = bottleneck_fwd(bp, out)
    return out


# --------------------------------------------------------------------------------------
# Counting decoder (CCM) — kernel size is a STATIC Python int (fixes the tracer bool bug)
# --------------------------------------------------------------------------------------
def counting_decoder_fwd(p, x, mask, out_channel, kernel_size):
    B, H, W, _ = x.shape
    t = conv2d(x, p["trans_w"], padding=kernel_size // 2)       # (B, H, W, 512)
    t = batchnorm2d(t, p["bn_g"], p["bn_b"])
    # channel attention
    y = jnp.mean(t, axis=(1, 2))                                # (B, 512)
    y = jax.nn.relu(linear(y, p["fc1_w"], p["fc1_b"]))
    y = jax.nn.sigmoid(linear(y, p["fc2_w"], p["fc2_b"]))
    t = t * y[:, None, None, :]
    # fused 1x1 pred conv + sigmoid + mask + spatial sum (single Pallas kernel, no transpose)
    return counting_pred(t.reshape(B, H * W, 512),
                         p["pred_w"].reshape(out_channel, 512).T,
                         mask.reshape(B, H * W))


# --------------------------------------------------------------------------------------
# GRU-attention word decoder (lax.scan over time; heavy matmuls hoisted out of the scan)
# --------------------------------------------------------------------------------------
def att_decoder_fwd(p, cfg, cnn_features, labels, counting_preds, feature_mask,
                    is_train=True):
    # TODO(synk): is_train=False (greedy decoding) branch and sine positional embedding of
    # the original repo are not implemented; teacher-forcing training path only.
    B, H, W, C = cnn_features.shape
    T = labels.shape[1]
    A = cfg["attention"]["attention_dim"]
    Hd = cfg["decoder"]["hidden_size"]
    In = cfg["decoder"]["input_size"]
    wck = cfg["attention"]["word_conv_kernel"]
    HW = H * W
    HWp = _rup(HW, 128)
    Cp = _rup(C, 128)

    # init hidden
    num = jnp.sum(cnn_features * feature_mask, axis=(1, 2))       # (B, C)
    den = jnp.sum(feature_mask, axis=(1, 2))                      # (B, 1)
    hidden0 = jnp.tanh(linear(num / den, p["init_w"], p["init_b"]))

    counting_ctx = linear(counting_preds, p["counting_ctx_w"], p["counting_ctx_b"])

    # loop-invariant attention operands: computed & cast to bf16 once, transposed so both
    # in-kernel contractions are plain MXU matmuls with lane-dense outputs.
    trans = conv2d(cnn_features, p["enc_feat_conv_w"], p["enc_feat_conv_b"],
                   padding=wck // 2)                              # (B, H, W, A)
    trans_t = jnp.transpose(trans.reshape(B, HW, A), (0, 2, 1))    # (B, A, HW)
    trans_t = jnp.pad(trans_t, ((0, 0), (0, 0), (0, HWp - HW))).astype(jnp.bfloat16)
    feat = jnp.pad(cnn_features.reshape(B, HW, C),
                   ((0, 0), (0, HWp - HW), (0, Cp - C))).astype(jnp.bfloat16)
    mask_row = jnp.pad(feature_mask.reshape(B, HW),
                       ((0, 0), (0, HWp - HW))).astype(jnp.float32)[:, None, :]

    # Coverage path: 11x11 conv (1->512, no bias) then Linear(512->A, no bias): merge into a
    # single 11x11 conv with A output channels (HWIO layout for lax.conv, NCHW-ish output).
    merged_cov_w = jnp.einsum("ac,cikl->aikl", p["attention_weight_w"],
                              p["attention_conv_w"])              # (A, 1, 11, 11)
    cov_w_hwio = jnp.transpose(merged_cov_w, (2, 3, 1, 0))         # (11, 11, 1, A)

    # per-step weights, fused where the inputs coincide
    w_hh_t = p["gru_w_hh"].T                                       # (Hd, 3Hd)
    qs_w = jnp.concatenate([p["hidden_weight_w"].T, p["word_state_w"].T], axis=1)
    qs_b = jnp.concatenate([p["hidden_weight_b"], p["word_state_b"]])
    word_ctx_wt = p["word_ctx_w"].T
    w_row = p["alpha_convert_w"].astype(jnp.bfloat16)              # (1, A)
    b11 = p["alpha_convert_b"].reshape(1, 1).astype(jnp.float32)

    # Hoisted out of the scan: GRU input gates + word-embedding projection, one matmul.
    prev_labels = jnp.concatenate([jnp.ones((B, 1), labels.dtype), labels[:, :-1]], axis=1)
    embs = jnp.take(p["embedding"], prev_labels, axis=0)           # (B, T, In)
    emb_proj_w = jnp.concatenate([p["gru_w_ih"].T, p["word_emb_w"].T], axis=1)
    emb_proj_b = jnp.concatenate([p["gru_b_ih"], p["word_emb_b"]])
    emb_proj = pmatmul(embs.reshape(B * T, In), emb_proj_w, emb_proj_b).reshape(B, T, 4 * Hd)
    gi_all = jnp.transpose(emb_proj[:, :, :3 * Hd], (1, 0, 2))     # (T, B, 3Hd)
    we_all = jnp.transpose(emb_proj[:, :, 3 * Hd:], (1, 0, 2))     # (T, B, Hd)

    alpha_sum0 = jnp.zeros((B, H, W, 1), jnp.float32)

    def step(carry, xs):
        hidden, alpha_sum = carry
        gi, we_t = xs

        # GRU cell: input gates precomputed; only the hidden path runs per step.
        gh = pmatmul(hidden, w_hh_t, p["gru_b_hh"])
        i_r, i_z, i_n = jnp.split(gi, 3, axis=1)
        h_r, h_z, h_n = jnp.split(gh, 3, axis=1)
        r = jax.nn.sigmoid(i_r + h_r)
        z = jax.nn.sigmoid(i_z + h_z)
        n = jnp.tanh(i_n + r * h_n)
        hidden = (1.0 - z) * n + z * hidden

        # fused hidden_weight (query) + word_state projection
        qs = pmatmul(hidden, qs_w, qs_b)
        query = qs[:, :A]
        state_part = qs[:, A:]

        # coverage conv on alpha_sum (kept NHWC, output laid out channel-major for the kernel)
        cov = jax.lax.conv_general_dilated(
            alpha_sum, cov_w_hwio, window_strides=(1, 1), padding=((5, 5), (5, 5)),
            dimension_numbers=("NHWC", "HWIO", "NCHW"))            # (B, A, H, W)
        cov_t = jnp.pad(cov.reshape(B, A, HW), ((0, 0), (0, 0), (0, HWp - HW)))

        ctx_p, alpha_p = attention_step(query.reshape(B, A, 1).astype(jnp.float32),
                                        cov_t.astype(jnp.float32),
                                        trans_t, w_row, b11, mask_row, feat)
        ctx = ctx_p[:, :C]
        alpha = alpha_p[:, :HW].reshape(B, H, W)
        alpha_sum = alpha_sum + alpha[..., None]

        ctx_part = pmatmul(ctx, word_ctx_wt, p["word_ctx_b"])
        out_state = state_part + ctx_part + we_t + counting_ctx
        return (hidden, alpha_sum), (out_state, alpha)

    _, (out_states, alphas) = jax.lax.scan(step, (hidden0, alpha_sum0), (gi_all, we_all))

    # word_convert hoisted out of the scan (one MXU-shaped matmul over all timesteps)
    word_probs = pmatmul(out_states.reshape(T * B, Hd), p["word_convert_w"].T,
                         p["word_convert_b"])
    word_probs = jnp.transpose(word_probs.reshape(T, B, -1), (1, 0, 2))
    word_alphas = jnp.transpose(alphas, (1, 0, 2, 3))
    return word_probs, word_alphas


# --------------------------------------------------------------------------------------
# Losses / labels
# --------------------------------------------------------------------------------------
def gen_counting_label(labels, channel, tag):
    ignore = (0, 1, 107, 108, 109, 110) if tag else ()
    keep = jnp.ones(labels.shape, jnp.float32)
    for v in ignore:
        keep = keep * (labels != v).astype(jnp.float32)
    oh = jax.nn.one_hot(labels, channel, dtype=jnp.float32)
    return jnp.sum(oh * keep[..., None], axis=1)


def smooth_l1_mean(pred, target):
    d = pred - target
    ad = jnp.abs(d)
    loss = jnp.where(ad < 1.0, 0.5 * d * d, ad - 0.5)
    return jnp.mean(loss)


def cross_entropy_mean(logits, targets):
    logp = jax.nn.log_softmax(logits, axis=-1)
    nll = -jnp.take_along_axis(logp, targets[:, None].astype(jnp.int32), axis=1)[:, 0]
    return jnp.mean(nll)


# --------------------------------------------------------------------------------------
# Full CAN forward
# --------------------------------------------------------------------------------------
def can_forward(P, cfg, images, images_mask, labels, labels_mask, is_train=True):
    # inputs arrive NCHW (PyTorch convention); single layout change at the boundary
    images_nhwc = jnp.transpose(images, (0, 2, 3, 1))
    mask_nhwc = jnp.transpose(images_mask, (0, 2, 3, 1))

    cnn_features = densenet_fwd(P["encoder"], images_nhwc)          # (B, H, W, C)
    ratio = cfg["densenet"]["ratio"]
    counting_mask = mask_nhwc[:, ::ratio, ::ratio, :]                # (B, H, W, 1)
    oc = cfg["counting_decoder"]["out_channel"]

    counting_labels = gen_counting_label(labels, oc, True)
    c1 = counting_decoder_fwd(P["cd1"], cnn_features, counting_mask, oc, 3)
    c2 = counting_decoder_fwd(P["cd2"], cnn_features, counting_mask, oc, 5)
    counting_preds = (c1 + c2) / 2.0
    counting_loss = (smooth_l1_mean(c1, counting_labels)
                     + smooth_l1_mean(c2, counting_labels)
                     + smooth_l1_mean(counting_preds, counting_labels))

    word_probs, _word_alphas = att_decoder_fwd(P["decoder"], cfg, cnn_features, labels,
                                               counting_preds, counting_mask, is_train)
    V = word_probs.shape[-1]
    word_loss = cross_entropy_mean(word_probs.reshape(-1, V), labels.reshape(-1))
    if cfg["use_label_mask"]:
        logp = jax.nn.log_softmax(word_probs.reshape(-1, V), axis=-1)
        per = -jnp.take_along_axis(logp, labels.reshape(-1)[:, None], axis=1)[:, 0]
        word_average_loss = jnp.sum(per * labels_mask.reshape(-1)) / (jnp.sum(labels_mask) + 1e-10)
    else:
        word_average_loss = word_loss
    return word_probs, counting_preds, word_average_loss, counting_loss


# --------------------------------------------------------------------------------------
# Deterministic parameter initialization
# --------------------------------------------------------------------------------------
class _Init:
    def __init__(self, key):
        self.key = key

    def normal(self, shape, scale=0.1):
        self.key, k = jax.random.split(self.key)
        return (scale * jax.random.normal(k, shape)).astype(jnp.float32)


def init_all_params(cfg, seed=0):
    rng = _Init(jax.random.PRNGKey(seed))
    gr = cfg["densenet"]["growthRate"]
    red = cfg["densenet"]["reduction"]
    ndb = cfg["densenet"]["nDenseBlocks"]
    in_ch = cfg["encoder"]["input_channel"]

    nch = 2 * gr
    enc = {"conv1_w": rng.normal((nch, in_ch, 7, 7))}

    def make_dense(nch):
        blocks = []
        for j in range(ndb):
            ic = nch + j * gr
            inter = 4 * gr
            blocks.append({
                "conv1_w": rng.normal((inter, ic, 1, 1)),
                "bn1_g": jnp.ones((inter,), jnp.float32), "bn1_b": jnp.zeros((inter,), jnp.float32),
                "conv2_w": rng.normal((gr, inter, 3, 3)),
                "bn2_g": jnp.ones((gr,), jnp.float32), "bn2_b": jnp.zeros((gr,), jnp.float32),
            })
        return blocks, nch + ndb * gr

    enc["dense1"], nch = make_dense(nch)
    nout = int(math.floor(nch * red))
    enc["trans1"] = {"conv_w": rng.normal((nout, nch, 1, 1)),
                     "bn_g": jnp.ones((nout,), jnp.float32), "bn_b": jnp.zeros((nout,), jnp.float32)}
    nch = nout
    enc["dense2"], nch = make_dense(nch)
    nout = int(math.floor(nch * red))
    enc["trans2"] = {"conv_w": rng.normal((nout, nch, 1, 1)),
                     "bn_g": jnp.ones((nout,), jnp.float32), "bn_b": jnp.zeros((nout,), jnp.float32)}
    nch = nout
    enc["dense3"], nch = make_dense(nch)
    assert nch == cfg["encoder"]["out_channel"], (nch, cfg["encoder"]["out_channel"])

    cd_in = cfg["counting_decoder"]["in_channel"]
    oc = cfg["counting_decoder"]["out_channel"]

    def make_cd(k):
        # NOTE: kernel size intentionally NOT stored in params (it is a static arg now).
        return {"trans_w": rng.normal((512, cd_in, k, k)),
                "bn_g": jnp.ones((512,), jnp.float32), "bn_b": jnp.zeros((512,), jnp.float32),
                "fc1_w": rng.normal((512 // 16, 512)), "fc1_b": jnp.zeros((512 // 16,), jnp.float32),
                "fc2_w": rng.normal((512, 512 // 16)), "fc2_b": jnp.zeros((512,), jnp.float32),
                "pred_w": rng.normal((oc, 512, 1, 1))}

    Cenc = cfg["encoder"]["out_channel"]
    Hd = cfg["decoder"]["hidden_size"]
    In = cfg["decoder"]["input_size"]
    A = cfg["attention"]["attention_dim"]
    V = cfg["word_num"]
    wck = cfg["attention"]["word_conv_kernel"]

    dec = {
        "init_w": rng.normal((Hd, Cenc)), "init_b": jnp.zeros((Hd,), jnp.float32),
        "embedding": rng.normal((V, In)),
        "gru_w_ih": rng.normal((3 * Hd, In)), "gru_w_hh": rng.normal((3 * Hd, Hd)),
        "gru_b_ih": jnp.zeros((3 * Hd,), jnp.float32), "gru_b_hh": jnp.zeros((3 * Hd,), jnp.float32),
        "hidden_weight_w": rng.normal((A, Hd)), "hidden_weight_b": jnp.zeros((A,), jnp.float32),
        "attention_conv_w": rng.normal((512, 1, 11, 11)),
        "attention_weight_w": rng.normal((A, 512)),
        "alpha_convert_w": rng.normal((1, A)), "alpha_convert_b": jnp.zeros((1,), jnp.float32),
        "enc_feat_conv_w": rng.normal((A, Cenc, wck, wck)), "enc_feat_conv_b": jnp.zeros((A,), jnp.float32),
        "word_state_w": rng.normal((Hd, Hd)), "word_state_b": jnp.zeros((Hd,), jnp.float32),
        "word_emb_w": rng.normal((Hd, In)), "word_emb_b": jnp.zeros((Hd,), jnp.float32),
        "word_ctx_w": rng.normal((Hd, Cenc)), "word_ctx_b": jnp.zeros((Hd,), jnp.float32),
        "counting_ctx_w": rng.normal((Hd, oc)), "counting_ctx_b": jnp.zeros((Hd,), jnp.float32),
        "word_convert_w": rng.normal((V, Hd)), "word_convert_b": jnp.zeros((V,), jnp.float32),
    }
    return {"encoder": enc, "cd1": make_cd(3), "cd2": make_cd(5), "decoder": dec}


# --------------------------------------------------------------------------------------
if __name__ == "__main__":
    cfg = {
        "use_label_mask": False,
        "encoder": {"input_channel": 1, "out_channel": 32},
        "densenet": {"ratio": 16, "growthRate": 8, "reduction": 0.5,
                     "bottleneck": True, "use_dropout": False, "nDenseBlocks": 2},
        "counting_decoder": {"in_channel": 32, "out_channel": 24},
        "decoder": {"net": "AttDecoder", "input_size": 16, "hidden_size": 32},
        "attention": {"attention_dim": 32, "word_conv_kernel": 1},
        "dropout": False,
        "word_num": 24,
    }

    # quick self-check of the Pallas matmul (bf16 operands, f32 accumulation)
    _a = jax.random.normal(jax.random.PRNGKey(3), (13, 37), jnp.float32)
    _b = jax.random.normal(jax.random.PRNGKey(4), (37, 9), jnp.float32)
    _bias = jax.random.normal(jax.random.PRNGKey(5), (9,), jnp.float32)
    _ref = (_a.astype(jnp.bfloat16).astype(jnp.float32)
            @ _b.astype(jnp.bfloat16).astype(jnp.float32)) + _bias
    assert jnp.allclose(pmatmul(_a, _b, _bias), _ref, atol=2e-2, rtol=2e-2), "matmul mismatch"

    P = init_all_params(cfg, seed=0)

    key = jax.random.PRNGKey(0)
    k_img, k_lab = jax.random.split(key)
    B, T = 2, 6
    images = jax.random.normal(k_img, (B, 1, 32, 32), jnp.float32)
    images_mask = jnp.ones((B, 1, 32, 32), jnp.float32)
    labels = jax.random.randint(k_lab, (B, T), 0, cfg["word_num"], dtype=jnp.int32)
    labels_mask = jnp.ones((B, T), jnp.float32)

    fwd = jax.jit(lambda P_, im, imm, lab, labm:
                  can_forward(P_, cfg, im, imm, lab, labm, True))
    word_probs, counting_preds, word_avg_loss, counting_loss = fwd(
        P, images, images_mask, labels, labels_mask)
    jax.block_until_ready((word_probs, counting_preds, word_avg_loss, counting_loss))

    assert word_probs.shape == (B, T, cfg["word_num"])
    assert counting_preds.shape == (B, cfg["counting_decoder"]["out_channel"])
    assert bool(jnp.isfinite(word_avg_loss)) and bool(jnp.isfinite(counting_loss))
    print("KERNEL_OK")
</pallas_src>

<mosaic_0001>
module attributes {stable_mosaic.version = 11 : i64} {
  func.func @_mm_bias_kernel(%arg0: i32, %arg1: i32, %arg2: i32, %arg3: memref<16x128xbf16, #tpu.memory_space<vmem>>, %arg4: memref<128x128xbf16, #tpu.memory_space<vmem>>, %arg5: memref<1x128xf32, #tpu.memory_space<vmem>>, %arg6: memref<16x128xf32, #tpu.memory_space<vmem>>, %arg7: memref<16x128xf32, #tpu.memory_space<vmem>>) attributes {dimension_semantics = [#tpu.dimension_semantics<parallel>, #tpu.dimension_semantics<parallel>, #tpu.dimension_semantics<arbitrary>], iteration_bounds = array<i64: 1, 1, 1>, scalar_prefetch = 0 : i64, scratch_operands = 1 : i64, tpu.core_type = #tpu.core_type<tc>, window_params = [{transform_indices = @transform_0, window_bounds = array<i64: 16, 128>}, {transform_indices = @transform_1, window_bounds = array<i64: 128, 128>}, {transform_indices = @transform_2, window_bounds = array<i64: 1, 128>}, {transform_indices = @transform_3, window_bounds = array<i64: 16, 128>}]} {
    %c0_i32 = arith.constant 0 : i32
    %0 = arith.cmpi eq, %arg2, %c0_i32 : i32
    %1 = arith.extui %0 : i1 to i32
    %c0_i32_0 = arith.constant 0 : i32
    %2 = arith.cmpi ne, %1, %c0_i32_0 : i32
    scf.if %2 {
      %cst_10 = arith.constant 0.000000e+00 : f32
      %12 = vector.broadcast %cst_10 : f32 to vector<16x128xf32>
      %c0_11 = arith.constant 0 : index
      %c0_12 = arith.constant 0 : index
      %13 = vector.load %arg7[%c0_11, %c0_12] : memref<16x128xf32, #tpu.memory_space<vmem>>, vector<16x128xf32>
      tpu.vector_store %arg7[%c0_11, %c0_12], %12 {strides = array<i32>} : memref<16x128xf32, #tpu.memory_space<vmem>>, vector<16x128xf32>,
    } else {
    }
    %c0 = arith.constant 0 : index
    %c0_1 = arith.constant 0 : index
    %3 = vector.load %arg7[%c0, %c0_1] : memref<16x128xf32, #tpu.memory_space<vmem>>, vector<16x128xf32>
    %c0_2 = arith.constant 0 : index
    %c0_3 = arith.constant 0 : index
    %4 = vector.load %arg3[%c0_2, %c0_3] : memref<16x128xbf16, #tpu.memory_space<vmem>>, vector<16x128xbf16>
    %c0_4 = arith.constant 0 : index
    %c0_5 = arith.constant 0 : index
    %5 = vector.load %arg4[%c0_4, %c0_5] : memref<128x128xbf16, #tpu.memory_space<vmem>>, vector<128x128xbf16>
    %cst = arith.constant dense<0.000000e+00> : vector<16x128xf32>
    %6 = tpu.matmul %4, %5, %cst {dimension_numbers = #tpu.dot_dimension_numbers<[1], [0], [0], [1], [0, 0, 1, 1], [], []>} : vector<16x128xbf16>, vector<128x128xbf16>, vector<16x128xf32> -> vector<16x128xf32>
    %7 = arith.addf %3, %6 : vector<16x128xf32>
    %c0_6 = arith.constant 0 : index
    %c0_7 = arith.constant 0 : index
    %8 = vector.load %arg7[%c0_6, %c0_7] : memref<16x128xf32, #tpu.memory_space<vmem>>, vector<16x128xf32>
    tpu.vector_store %arg7[%c0_6, %c0_7], %7 {strides = array<i32>} : memref<16x128xf32, #tpu.memory_space<vmem>>, vector<16x128xf32>,
    %c0_i32_8 = arith.constant 0 : i32
    %9 = arith.cmpi eq, %arg2, %c0_i32_8 : i32
    %10 = arith.extui %9 : i1 to i32
    %c0_i32_9 = arith.constant 0 : i32
    %11 = arith.cmpi ne, %10, %c0_i32_9 : i32
    scf.if %11 {
      %c0_10 = arith.constant 0 : index
      %c0_11 = arith.constant 0 : index
      %12 = vector.load %arg7[%c0_10, %c0_11] : memref<16x128xf32, #tpu.memory_space<vmem>>, vector<16x128xf32>
      %c0_12 = arith.constant 0 : index
      %c0_13 = arith.constant 0 : index
      %13 = vector.load %arg5[%c0_12, %c0_13] : memref<1x128xf32, #tpu.memory_space<vmem>>, vector<1x128xf32>
      %14 = vector.broadcast %13 : vector<1x128xf32> to vector<16x128xf32>
      %15 = arith.addf %12, %14 : vector<16x128xf32>
      %c0_14 = arith.constant 0 : index
      %c0_15 = arith.constant 0 : index
      %16 = vector.load %arg6[%c0_14, %c0_15] : memref<16x128xf32, #tpu.memory_space<vmem>>, vector<16x128xf32>
      tpu.vector_store %arg6[%c0_14, %c0_15], %15 {strides = array<i32>} : memref<16x128xf32, #tpu.memory_space<vmem>>, vector<16x128xf32>,
    } else {
    }
    return
  }
  func.func @transform_0(%arg0: i32, %arg1: i32, %arg2: i32) -> (i32, i32) {
    %c0_i32 = arith.constant 0 : i32
    return %arg0, %arg2 : i32, i32
  }
  func.func @transform_1(%arg0: i32, %arg1: i32, %arg2: i32) -> (i32, i32) {
    %c0_i32 = arith.constant 0 : i32
    return %arg2, %arg1 : i32, i32
  }
  func.func @transform_2(%arg0: i32, %arg1: i32, %arg2: i32) -> (i32, i32) {
    %c0_i32 = arith.constant 0 : i32
    %c0_i32_0 = arith.constant 0 : i32
    return %c0_i32, %arg1 : i32, i32
  }
  func.func @transform_3(%arg0: i32, %arg1: i32, %arg2: i32) -> (i32, i32) {
    %c0_i32 = arith.constant 0 : i32
    return %arg0, %arg1 : i32, i32
  }
}

</mosaic_0001>

<bundles_post_ra>
// kernel: tpu_custom_call.1
= control target key start
LH: loop header
LB: loop body
LE: loop exit
PB: predicated region body
PF: predicated region fallthrough
CT: control target
= control target key end

     0   :  { %8 = vsyncpa [#allocation4], 0  ;;  %s348_s0 = inlined_call_operand.hbm [shape: bf16[16,128], index: 0, kind: input, shape index: {}]   ;;  %s349_s1 = inlined_call_operand.hbm [shape: bf16[128,128], index: 1, kind: input, shape index: {}]   ;;  %s350_s2 = inlined_call_operand.vmem [shape: f32[1,128], index: 2, kind: input, shape index: {}]   ;;  %s351_s3 = inlined_call_operand.hbm [shape: f32[16,128], index: 3, kind: output, shape index: {}]  }
   0x1   :  { %9 = vsyncpa [#allocation7], 0 }
   0x2   :  { %10 = vsyncpa [#allocation5], 0  ;;  %s15_s14 = sshll.u32 %s348_s0, 4  ;;  %s309_s15 = smov [#allocation3]   ;;  %s16_s14 = int_to_ptr.hbm [resolvable:$true] %s15_s14 }
   0x3   :  { %s17_s16 = sshll.u32 %s309_s15, 4  ;;  %s28_s19 = sshll.u32 %s349_s1, 4  ;;  %s18_s16 = int_to_ptr.vmem [resolvable:$true] %s17_s16  ;;  %s29_s19 = int_to_ptr.hbm [resolvable:$true] %s28_s19 }
   0x4   :  { %s310_s20 = smov 64   ;;  %s311_s21 = smov 4  }
   0x5   :  { %23 = dma.hbm_to_vmem [thread:$0]  %s16_s14, 128, %s18_s16, [#allocation4], %s310_s20, %s310_s20, %s311_s21  }
   0x6   :  { %s312_s22 = smov [#allocation6]  }
   0x7   :  { %s30_s23 = sshll.u32 %s312_s22, 4  ;;  %s31_s23 = int_to_ptr.vmem [resolvable:$true] %s30_s23 }
   0x8   :  { %36 = dma.hbm_to_vmem [thread:$0]  %s29_s19, 1024, %s31_s23, [#allocation7], %s310_s20, %s310_s20, %s311_s21  }
   0x9   :  { %303 = dma.done.wait [#allocation4], 128  }
   0xa   :  { %304 = vsyncadd [#allocation4], 4294967168 }
   0xb   :  { %305 = dma.done.wait [#allocation7], 1024  }
   0xc   :  { %306 = vsyncadd [#allocation7], 4294966272  ;;  %v222_v0 = vld [vmem:[#allocation6 + $0x38] sm:$0xff]  ;;  %v221_v1 = vld [vmem:[#allocation6 + $0x30] sm:$0xff]  ;;  %s313_s24 = smov [#allocation8]   ;;  %s164_s28 = sshll.u32 %s351_s3, 4  ;;  %s165_s28 = int_to_ptr.hbm [resolvable:$true] %s164_s28 }
   0xd   :  { %127 = vmatpush.bf16.msra.mxu0 %v222_v0  ;;  %v220_v2 = vld [vmem:[#allocation6 + $0x28] sm:$0xff]  ;;  %v219_v3 = vld [vmem:[#allocation6 + $0x20] sm:$0xff]  ;;  %v218_v4 = vld [vmem:[#allocation6 + $0x18] sm:$0xff]  ;;  %s162_s25 = sshll.u32 %s313_s24, 4  ;;  %s314_s29 = smov 128   ;;  %s163_s25 = int_to_ptr.vmem [resolvable:$true] %s162_s25 }
   0xe   :  { %v217_v5 = vld [vmem:[#allocation6 + $0x10] sm:$0xff]  ;;  %v216_v6 = vld [vmem:[#allocation6 + $0x8] sm:$0xff]  ;;  %v215_v7 = vld [vmem:[#allocation6] sm:$0xff]  ;;  %s315_s30 = smov 8  }
   0xf   :  { %v214_v8 = vld [vmem:[#allocation3] sm:$0xff] }
  0x10   :  { %v230_v9 = vld [vmem:[%s350_s2] ss:$0 sm:$0xff] }
  0x11   :  { %128 = vmatpush.bf16.msra.mxu0 %v221_v1 }
  0x15   :  { %129 = vmatpush.bf16.msra.mxu0 %v220_v2 }
  0x19   :  { %130 = vmatpush.bf16.msra.mxu0 %v219_v3 }
  0x1d   :  { %131 = vmatpush.bf16.msra.mxu0 %v218_v4 }
  0x21   :  { %132 = vmatpush.bf16.msra.mxu0 %v217_v5 }
  0x25   :  { %133 = vmatpush.bf16.msra.mxu0 %v216_v6 }
  0x29   :  { %134 = vmatpush.bf16.msra.mxu0 %v215_v7 }
  0x2c   :  { %135 = vmatmul.bf16.vlgmr.msra.gmra.mxu0 %v214_v8 }
  0xa9   :  { %v136_v10 = vpop.f32.mrf.mxu0 }
  0xaa   :  { %v154_v11 = vadd.f32 %v230_v9, %v136_v10 }
  0xac   :  { %156 = vst [vmem:[#allocation8] sm:$0xff] %v154_v11 }
  0xb1   :  { %v138_v12 = vpop.f32.mrf.mxu0 }
  0xb2   :  { %v155_v13 = vadd.f32 %v230_v9, %v138_v12 }
  0xb4   :  { %157 = vst [vmem:[#allocation8 + $0x8] sm:$0xff] %v155_v13 }
  0xb5   :  { %170 = dma.vmem_to_hbm [thread:$0]  %s163_s25, 256, %s165_s28, [#allocation5], %s314_s29, %s314_s29, %s315_s30  }
  0xb6   :  { %307 = dma.done.wait [#allocation5], 256  }
  0xb7   :  { %308 = vsyncadd [#allocation5], 4294967040 }
  0xb8   :  { %175 = vsyncpa [#allocation4], 1 }
  0xb9   :  { %176 = vsyncpa [#allocation7], 1 }
  0xba   :  { %177 = vsyncpa [#allocation5], 1 }

</bundles_post_ra>
